<compile_context>
chip_gen: v5e
topology: v5e:2x2
jax: 0.10.0
libtpu: 0.0.40
codegen_flags: <defaults>
</compile_context>

<pallas_src>
import functools

import numpy as np

import jax
import jax.numpy as jnp
from jax import lax
from jax.experimental import pallas as pl
from jax.experimental.pallas import tpu as pltpu


def _round_up(x, mult):
    return (x + mult - 1) // mult * mult


def _djp_mmd_tile_kernel(*refs, n_parts, kernel_num, use_recurrence, imul,
                         key_resident, tile):
    """One (TQ, TK) tile of the pairwise space.

    Accumulates the scalar  u_q^T K_tile v_k  into a lane-dense (8,128)
    per-q-tile output block (resident across the key axis).
    """
    ratios_ref = refs[0]
    xq_refs = refs[1:1 + n_parts]
    xk_refs = refs[1 + n_parts:1 + 2 * n_parts]
    sqq_ref, sqk_ref, uq_ref, vk_ref, out_ref = refs[1 + 2 * n_parts:]

    ki = pl.program_id(1)

    @pl.when(ki == 0)
    def _():
        out_ref[...] = jnp.zeros_like(out_ref)

    xq = [r[...] for r in xq_refs]
    if key_resident:
        # Key-side matrix is resident (full-array block); slice the tile here.
        ks = pl.multiple_of(ki * tile, 128)
        xk = [r[pl.ds(ks, tile), :] for r in xk_refs]
    else:
        xk = [r[...] for r in xk_refs]

    dims = (((1,), (1,)), ((), ()))
    if n_parts == 2:
        # hi/lo bf16 split: gram ~= hi.hi + hi.lo + lo.hi (lo.lo ~ 2^-16, dropped).
        hi_q, lo_q = xq
        hi_k, lo_k = xk
        gram = lax.dot_general(hi_q, hi_k, dims, preferred_element_type=jnp.float32)
        gram = gram + lax.dot_general(hi_q, lo_k, dims,
                                      preferred_element_type=jnp.float32)
        gram = gram + lax.dot_general(lo_q, hi_k, dims,
                                      preferred_element_type=jnp.float32)
    else:
        gram = lax.dot_general(xq[0], xk[0], dims,
                               preferred_element_type=jnp.float32)

    # arg = -L2 / bw_widest  (features / sq-norms pre-scaled in the wrapper);
    # clamp at 0 so rounding can never produce kernel values > 1.
    arg = jnp.minimum(gram + sqq_ref[...] + sqk_ref[...], 0.0)

    if use_recurrence:
        # One exp (widest bandwidth) on the EUP; remaining kernel_num-1 terms by
        # repeated multiplication on the VPU:
        #   exp(arg * mul^j) = exp(arg * mul^(j-1)) ** mul     (integer mul)
        k = jnp.exp(arg)
        ksum = k
        for _ in range(kernel_num - 1):
            kp = k
            for _ in range(imul - 1):
                kp = kp * k
            k = kp
            ksum = ksum + k
    else:
        # Non-integer kernel_mul fallback: one exp per bandwidth, scalar
        # argument ratios mul^j hoisted to SMEM.
        ksum = jnp.exp(arg)
        for j in range(1, kernel_num):
            ksum = ksum + jnp.exp(arg * ratios_ref[j])

    # Scalar contribution of this tile:  u_q^T (K_tile v_k).
    kv = jnp.sum(ksum * vk_ref[...], axis=1, keepdims=True)     # (T, 1)
    s = jnp.sum(uq_ref[...] * kv, axis=0, keepdims=True)        # (1, 1)
    out_ref[...] += s                                            # (8, 128), unmasked


def _build_label_mats(source_label, target_logits, num_class):
    C = num_class
    ys = jax.nn.one_hot(source_label, C, dtype=jnp.float32)              # (m, C)
    target_label = jnp.argmax(target_logits, axis=1)
    yt = jax.nn.one_hot(target_label, C, dtype=jnp.float32)              # (n, C)
    # Ms[:, (C-1)i:(C-1)(i+1)] = Ys[:, i] repeated (C-1) times
    ms = jnp.repeat(ys, C - 1, axis=1)                                   # (m, (C-1)C)
    # Mt[:, (C-1)i:(C-1)(i+1)] = Yt[:, classes != i]
    idx = np.concatenate([[j for j in range(C) if j != i] for i in range(C)])
    mt = yt[:, jnp.asarray(idx, dtype=jnp.int32)]                        # (n, (C-1)C)
    return ys, yt, ms, mt


def _choose_tile(N, d, block):
    if block is not None:
        assert block % 128 == 0, "block must be a multiple of 128"
        t = int(block)
    else:
        # Big tiles amortize per-grid-step overhead; back off for huge d so the
        # footprint stays comfortable inside v7x's 64 MiB VMEM per TensorCore.
        t = 256 if d >= 2048 else 512
    n128 = _round_up(N, 128)
    if N <= 128:
        return 128
    # Ensure >= 2 query blocks so both v7x TensorCores get work on the
    # "parallel" axis (no effect on single-TC v5e/v6e).
    half = max(128, (n128 // 2) // 128 * 128)
    return max(128, min(t, half, n128))


def djp_mmd_loss(source, target, source_label, target_logits, num_class,
                 kernel_mul=2.0, kernel_num=5, block=None, gram_mode="split",
                 key_resident=None):
    assert gram_mode in ("split", "bf16", "f32")
    hp = lax.Precision.HIGHEST
    source = source.astype(jnp.float32)
    target = target.astype(jnp.float32)
    m, d = source.shape
    n = target.shape[0]
    C = int(num_class)
    N = m + n
    kernel_num = int(kernel_num)

    # ---------------- label-side glue (O(N*C^2), plain JAX) -----------------
    ys, yt, ms, mt = _build_label_mats(source_label, target_logits, C)
    y = jnp.concatenate([ys, yt], axis=0)                     # (N, C)
    mm = jnp.concatenate([ms, mt], axis=0)                    # (N, (C-1)C)
    u = jnp.concatenate([jnp.full((m,), 1.0 / m, jnp.float32),
                         jnp.full((n,), -1.0 / n, jnp.float32)])
    # v = M @ u  with  M = Y Y^T - 0.1 Mm Mm^T   (M never materialized)
    v = (jnp.dot(y, jnp.dot(y.T, u, precision=hp), precision=hp)
         - 0.1 * jnp.dot(mm, jnp.dot(mm.T, u, precision=hp), precision=hp))

    total = jnp.concatenate([source, target], axis=0)         # (N, d)
    sq = jnp.sum(total * total, axis=1)                       # (N,)

    # Exact sum of pairwise squared distances without the NxN matrix:
    #   sum_{ij} ||x_i - x_j||^2 = 2*N*sum_i ||x_i||^2 - 2*||sum_i x_i||^2
    col = jnp.sum(total, axis=0)
    l2_sum = 2.0 * N * jnp.sum(sq) - 2.0 * jnp.sum(col * col)
    bandwidth = l2_sum / float(N * N - N)
    bandwidth = bandwidth / (float(kernel_mul) ** (kernel_num // 2))
    bw_widest = bandwidth * float(kernel_mul) ** (kernel_num - 1)
    neg_inv_bw = -1.0 / bw_widest                              # < 0, traced scalar
    ratios = (float(kernel_mul)
              ** jnp.arange(kernel_num, dtype=jnp.float32)).astype(jnp.float32)

    # ---------------- padding, pre-scaling & tiling --------------------------
    tile = _choose_tile(N, d, block)
    n_pad = _round_up(N, tile)
    pad = n_pad - N

    total_p = jnp.pad(total, ((0, pad), (0, 0)))
    # Fold sqrt(2/bw_widest) into the features (MXU emits the scaled cross term)
    # and -1/bw_widest into the squared norms (kept in f32).
    x_scaled = total_p * jnp.sqrt(-2.0 * neg_inv_bw)
    if gram_mode == "split":
        x_hi = x_scaled.astype(jnp.bfloat16)
        x_lo = (x_scaled - x_hi.astype(jnp.float32)).astype(jnp.bfloat16)
        x_parts = [x_hi, x_lo]
    elif gram_mode == "bf16":
        x_parts = [x_scaled.astype(jnp.bfloat16)]
    else:
        x_parts = [x_scaled]
    n_parts = len(x_parts)
    bytes_x = 2 if gram_mode in ("split", "bf16") else 4

    sq_s = jnp.pad(sq * neg_inv_bw, (0, pad))
    sq_col = sq_s.reshape(n_pad, 1)
    sq_row = sq_s.reshape(1, n_pad)
    u_col = jnp.pad(u, (0, pad)).reshape(n_pad, 1)             # 0 on padded rows
    v_row = jnp.pad(v, (0, pad)).reshape(1, n_pad)             # 0 on padded cols

    # Keep key-side features VMEM-resident (single DMA) when they fit even on
    # v7x (64 MiB/TC), assuming worst-case double buffering.
    if key_resident is None:
        key_resident = 2 * n_parts * n_pad * d * bytes_x <= (16 << 20)
    key_resident = bool(key_resident)

    q_bytes = 2 * n_parts * tile * d * bytes_x
    k_bytes = 2 * n_parts * (n_pad if key_resident else tile) * d * bytes_x
    interm = 12 * tile * tile * 4
    vmem_limit = int(min(max(q_bytes + k_bytes + interm + (4 << 20), 32 << 20),
                         56 << 20))

    use_rec = (float(kernel_mul) == int(kernel_mul)) and int(kernel_mul) >= 1
    kernel = functools.partial(
        _djp_mmd_tile_kernel,
        n_parts=n_parts,
        kernel_num=kernel_num,
        use_recurrence=bool(use_rec),
        imul=max(int(kernel_mul), 1),
        key_resident=key_resident,
        tile=tile)

    n_q = n_pad // tile

    def q_spec():
        return pl.BlockSpec((tile, d), lambda qi, ki: (qi, 0))

    def k_spec():
        if key_resident:
            return pl.BlockSpec((n_pad, d), lambda qi, ki: (0, 0))
        return pl.BlockSpec((tile, d), lambda qi, ki: (ki, 0))

    in_specs = ([pl.BlockSpec(memory_space=pltpu.MemorySpace.SMEM)]    # ratios
                + [q_spec() for _ in range(n_parts)]                   # x (query)
                + [k_spec() for _ in range(n_parts)]                   # x (key)
                + [pl.BlockSpec((tile, 1), lambda qi, ki: (qi, 0)),    # sqq (scaled)
                   pl.BlockSpec((1, tile), lambda qi, ki: (0, ki)),    # sqk (scaled)
                   pl.BlockSpec((tile, 1), lambda qi, ki: (qi, 0)),    # u column
                   pl.BlockSpec((1, tile), lambda qi, ki: (0, ki))])   # v row
    inputs = [ratios] + x_parts + x_parts + [sq_col, sq_row, u_col, v_row]

    out = pl.pallas_call(
        kernel,
        grid=(n_q, n_pad // tile),
        in_specs=in_specs,
        out_specs=pl.BlockSpec((8, 128), lambda qi, ki: (qi, 0)),
        out_shape=jax.ShapeDtypeStruct((n_q * 8, 128), jnp.float32),
        compiler_params=pltpu.CompilerParams(
            dimension_semantics=("parallel", "arbitrary"),
            vmem_limit_bytes=vmem_limit),
    )(*inputs)

    # loss = | u^T K (M u) |.  Every lane of a q-block holds the same partial.
    return jnp.abs(jnp.sum(out[::8, 0]))


def _reference_loss(source, target, source_label, target_logits, num_class,
                    kernel_mul=2.0, kernel_num=5):
    """Pure-JAX mirror of the PyTorch forward (for a silent sanity check)."""
    hp = lax.Precision.HIGHEST
    m = source.shape[0]
    C = num_class
    ys, yt, ms, mt = _build_label_mats(source_label, target_logits, C)
    y = jnp.concatenate([ys, yt], axis=0)
    mm = jnp.concatenate([ms, mt], axis=0)
    rmin = jnp.dot(y, y.T, precision=hp)
    rmax = jnp.dot(mm, mm.T, precision=hp)
    M = rmin - 0.1 * rmax

    total = jnp.concatenate([source, target], axis=0).astype(jnp.float32)
    N = total.shape[0]
    diff = total[None, :, :] - total[:, None, :]
    l2 = jnp.sum(diff * diff, axis=2)
    bw = jnp.sum(l2) / (N * N - N)
    bw = bw / (kernel_mul ** (kernel_num // 2))
    kernels = sum(jnp.exp(-l2 / (bw * kernel_mul ** i)) for i in range(kernel_num))

    temp = jnp.dot(kernels, M, precision=hp)
    xx = jnp.mean(temp[:m, :m])
    yy = jnp.mean(temp[m:, m:])
    xy = jnp.mean(temp[:m, m:])
    yx = jnp.mean(temp[m:, :m])
    return jnp.abs(xx + yy - xy - yx)


if __name__ == "__main__":
    key = jax.random.PRNGKey(0)
    k1, k2, k3, k4 = jax.random.split(key, 4)

    # Case 1: small shapes consistent with the module forward (single tile,
    # bf16-split gram, resident key, exp recurrence).
    m, n, d = 8, 8, 32
    num_class = 4
    source = jax.random.normal(k1, (m, d), dtype=jnp.float32)
    target = jax.random.normal(k2, (n, d), dtype=jnp.float32) + 0.5
    source_label = jax.random.randint(k3, (m,), 0, num_class, dtype=jnp.int32)
    target_logits = jax.random.normal(k4, (n, num_class), dtype=jnp.float32)

    loss = jax.block_until_ready(
        djp_mmd_loss(source, target, source_label, target_logits, num_class))
    ref = jax.block_until_ready(
        _reference_loss(source, target, source_label, target_logits, num_class))
    assert jnp.isfinite(loss)
    assert jnp.allclose(loss, ref, rtol=1e-2, atol=1e-3), (loss, ref)

    # Case 2: m != n -> zero padding + (2, 2) tile grid.
    k5, k6, k7, k8 = jax.random.split(jax.random.PRNGKey(1), 4)
    m2, n2, d2 = 96, 80, 64            # N = 176 -> padded to 256 with tile 128
    src2 = jax.random.normal(k5, (m2, d2), dtype=jnp.float32)
    tgt2 = jax.random.normal(k6, (n2, d2), dtype=jnp.float32) * 1.3 + 0.2
    lab2 = jax.random.randint(k7, (m2,), 0, num_class, dtype=jnp.int32)
    log2 = jax.random.normal(k8, (n2, num_class), dtype=jnp.float32)

    loss2 = jax.block_until_ready(
        djp_mmd_loss(src2, tgt2, lab2, log2, num_class, block=128))
    ref2 = jax.block_until_ready(
        _reference_loss(src2, tgt2, lab2, log2, num_class))
    assert jnp.isfinite(loss2)
    assert jnp.allclose(loss2, ref2, rtol=1e-2, atol=1e-3), (loss2, ref2)

    # Case 3: streamed (non-resident) key path, single-operand f32 gram and the
    # non-integer kernel_mul fallback (one exp per bandwidth from SMEM ratios).
    loss3 = jax.block_until_ready(
        djp_mmd_loss(src2, tgt2, lab2, log2, num_class, kernel_mul=1.75,
                     block=128, gram_mode="f32", key_resident=False))
    ref3 = jax.block_until_ready(
        _reference_loss(src2, tgt2, lab2, log2, num_class, kernel_mul=1.75))
    assert jnp.isfinite(loss3)
    assert jnp.allclose(loss3, ref3, rtol=1e-2, atol=1e-3), (loss3, ref3)

    print("KERNEL_OK")
</pallas_src>

<mosaic_0001>
module attributes {stable_mosaic.version = 11 : i64} {
  func.func @_djp_mmd_tile_kernel(%arg0: i32, %arg1: i32, %arg2: memref<5xf32, #tpu.memory_space<smem>>, %arg3: memref<128x32xbf16, #tpu.memory_space<vmem>>, %arg4: memref<128x32xbf16, #tpu.memory_space<vmem>>, %arg5: memref<128x32xbf16, #tpu.memory_space<vmem>>, %arg6: memref<128x32xbf16, #tpu.memory_space<vmem>>, %arg7: memref<128x1xf32, #tpu.memory_space<vmem>>, %arg8: memref<1x128xf32, #tpu.memory_space<vmem>>, %arg9: memref<128x1xf32, #tpu.memory_space<vmem>>, %arg10: memref<1x128xf32, #tpu.memory_space<vmem>>, %arg11: memref<8x128xf32, #tpu.memory_space<vmem>>) attributes {dimension_semantics = [#tpu.dimension_semantics<parallel>, #tpu.dimension_semantics<arbitrary>], iteration_bounds = array<i64: 1, 1>, scalar_prefetch = 0 : i64, scratch_operands = 0 : i64, tpu.core_type = #tpu.core_type<tc>, window_params = [{transform_indices = @transform_0, window_bounds = array<i64: 5>}, {transform_indices = @transform_1, window_bounds = array<i64: 128, 32>}, {transform_indices = @transform_2, window_bounds = array<i64: 128, 32>}, {pipeline_mode = #tpu.pipeline_mode<synchronous>, transform_indices = @transform_3, window_bounds = array<i64: 128, 32>}, {pipeline_mode = #tpu.pipeline_mode<synchronous>, transform_indices = @transform_4, window_bounds = array<i64: 128, 32>}, {transform_indices = @transform_5, window_bounds = array<i64: 128, 1>}, {transform_indices = @transform_6, window_bounds = array<i64: 1, 128>}, {transform_indices = @transform_7, window_bounds = array<i64: 128, 1>}, {transform_indices = @transform_8, window_bounds = array<i64: 1, 128>}, {transform_indices = @transform_9, window_bounds = array<i64: 8, 128>}]} {
    %c0_i32 = arith.constant 0 : i32
    %0 = arith.cmpi eq, %arg1, %c0_i32 : i32
    %1 = arith.extui %0 : i1 to i32
    %c0_i32_0 = arith.constant 0 : i32
    %2 = arith.cmpi ne, %1, %c0_i32_0 : i32
    scf.if %2 {
      %cst_23 = arith.constant 0.000000e+00 : f32
      %46 = vector.broadcast %cst_23 : f32 to vector<8x128xf32>
      %c0_24 = arith.constant 0 : index
      %c0_25 = arith.constant 0 : index
      %47 = vector.load %arg11[%c0_24, %c0_25] : memref<8x128xf32, #tpu.memory_space<vmem>>, vector<8x128xf32>
      tpu.vector_store %arg11[%c0_24, %c0_25], %46 {strides = array<i32>} : memref<8x128xf32, #tpu.memory_space<vmem>>, vector<8x128xf32>,
    } else {
    }
    %c0 = arith.constant 0 : index
    %c0_1 = arith.constant 0 : index
    %3 = vector.load %arg3[%c0, %c0_1] : memref<128x32xbf16, #tpu.memory_space<vmem>>, vector<128x32xbf16>
    %c0_2 = arith.constant 0 : index
    %c0_3 = arith.constant 0 : index
    %4 = vector.load %arg4[%c0_2, %c0_3] : memref<128x32xbf16, #tpu.memory_space<vmem>>, vector<128x32xbf16>
    %c128_i32 = arith.constant 128 : i32
    %5 = arith.muli %arg1, %c128_i32 : i32
    %6 = tpu.assume_multiple %5, 128 : i32
    %7 = arith.index_cast %6 : i32 to index
    %c0_4 = arith.constant 0 : index
    %8 = vector.load %arg5[%7, %c0_4] : memref<128x32xbf16, #tpu.memory_space<vmem>>, vector<128x32xbf16>
    %9 = arith.index_cast %6 : i32 to index
    %c0_5 = arith.constant 0 : index
    %10 = vector.load %arg6[%9, %c0_5] : memref<128x32xbf16, #tpu.memory_space<vmem>>, vector<128x32xbf16>
    %cst = arith.constant dense<0.000000e+00> : vector<128x128xf32>
    %11 = tpu.matmul %3, %8, %cst {dimension_numbers = #tpu.dot_dimension_numbers<[1], [1], [0], [0], [0, 0, 1, 0], [], []>} : vector<128x32xbf16>, vector<128x32xbf16>, vector<128x128xf32> -> vector<128x128xf32>
    %cst_6 = arith.constant dense<0.000000e+00> : vector<128x128xf32>
    %12 = tpu.matmul %3, %10, %cst_6 {dimension_numbers = #tpu.dot_dimension_numbers<[1], [1], [0], [0], [0, 0, 1, 0], [], []>} : vector<128x32xbf16>, vector<128x32xbf16>, vector<128x128xf32> -> vector<128x128xf32>
    %13 = arith.addf %11, %12 : vector<128x128xf32>
    %cst_7 = arith.constant dense<0.000000e+00> : vector<128x128xf32>
    %14 = tpu.matmul %4, %8, %cst_7 {dimension_numbers = #tpu.dot_dimension_numbers<[1], [1], [0], [0], [0, 0, 1, 0], [], []>} : vector<128x32xbf16>, vector<128x32xbf16>, vector<128x128xf32> -> vector<128x128xf32>
    %15 = arith.addf %13, %14 : vector<128x128xf32>
    %c0_8 = arith.constant 0 : index
    %c0_9 = arith.constant 0 : index
    %16 = vector.load %arg7[%c0_8, %c0_9] : memref<128x1xf32, #tpu.memory_space<vmem>>, vector<128x1xf32>
    %17 = vector.broadcast %16 : vector<128x1xf32> to vector<128x128xf32>
    %18 = arith.addf %15, %17 : vector<128x128xf32>
    %c0_10 = arith.constant 0 : index
    %c0_11 = arith.constant 0 : index
    %19 = vector.load %arg8[%c0_10, %c0_11] : memref<1x128xf32, #tpu.memory_space<vmem>>, vector<1x128xf32>
    %20 = vector.broadcast %19 : vector<1x128xf32> to vector<128x128xf32>
    %21 = arith.addf %18, %20 : vector<128x128xf32>
    %cst_12 = arith.constant 0.000000e+00 : f32
    %22 = vector.broadcast %cst_12 : f32 to vector<128x128xf32>
    %23 = arith.minimumf %21, %22 : vector<128x128xf32>
    %24 = math.exp %23 : vector<128x128xf32>
    %25 = arith.mulf %24, %24 : vector<128x128xf32>
    %26 = arith.addf %24, %25 : vector<128x128xf32>
    %27 = arith.mulf %25, %25 : vector<128x128xf32>
    %28 = arith.addf %26, %27 : vector<128x128xf32>
    %29 = arith.mulf %27, %27 : vector<128x128xf32>
    %30 = arith.addf %28, %29 : vector<128x128xf32>
    %31 = arith.mulf %29, %29 : vector<128x128xf32>
    %32 = arith.addf %30, %31 : vector<128x128xf32>
    %c0_13 = arith.constant 0 : index
    %c0_14 = arith.constant 0 : index
    %33 = vector.load %arg10[%c0_13, %c0_14] : memref<1x128xf32, #tpu.memory_space<vmem>>, vector<1x128xf32>
    %34 = vector.broadcast %33 : vector<1x128xf32> to vector<128x128xf32>
    %35 = arith.mulf %32, %34 : vector<128x128xf32>
    %cst_15 = arith.constant dense<0.000000e+00> : vector<128xf32>
    %36 = vector.multi_reduction <add>, %35, %cst_15 [1] : vector<128x128xf32> to vector<128xf32>
    %37 = vector.shape_cast %36 : vector<128xf32> to vector<128x1xf32>
    %c0_16 = arith.constant 0 : index
    %c0_17 = arith.constant 0 : index
    %38 = vector.load %arg9[%c0_16, %c0_17] : memref<128x1xf32, #tpu.memory_space<vmem>>, vector<128x1xf32>
    %39 = arith.mulf %38, %37 : vector<128x1xf32>
    %cst_18 = arith.constant dense<0.000000e+00> : vector<1xf32>
    %40 = vector.multi_reduction <add>, %39, %cst_18 [0] : vector<128x1xf32> to vector<1xf32>
    %41 = vector.shape_cast %40 : vector<1xf32> to vector<1x1xf32>
    %c0_19 = arith.constant 0 : index
    %c0_20 = arith.constant 0 : index
    %42 = vector.load %arg11[%c0_19, %c0_20] : memref<8x128xf32, #tpu.memory_space<vmem>>, vector<8x128xf32>
    %43 = vector.broadcast %41 : vector<1x1xf32> to vector<8x128xf32>
    %44 = arith.addf %42, %43 : vector<8x128xf32>
    %c0_21 = arith.constant 0 : index
    %c0_22 = arith.constant 0 : index
    %45 = vector.load %arg11[%c0_21, %c0_22] : memref<8x128xf32, #tpu.memory_space<vmem>>, vector<8x128xf32>
    tpu.vector_store %arg11[%c0_21, %c0_22], %44 {strides = array<i32>} : memref<8x128xf32, #tpu.memory_space<vmem>>, vector<8x128xf32>,
    return
  }
  func.func @transform_0(%arg0: i32, %arg1: i32) -> i32 {
    %c0_i32 = arith.constant 0 : i32
    %c0_i32_0 = arith.constant 0 : i32
    return %c0_i32 : i32
  }
  func.func @transform_1(%arg0: i32, %arg1: i32) -> (i32, i32) {
    %c0_i32 = arith.constant 0 : i32
    %c0_i32_0 = arith.constant 0 : i32
    return %arg0, %c0_i32 : i32, i32
  }
  func.func @transform_2(%arg0: i32, %arg1: i32) -> (i32, i32) {
    %c0_i32 = arith.constant 0 : i32
    %c0_i32_0 = arith.constant 0 : i32
    return %arg0, %c0_i32 : i32, i32
  }
  func.func @transform_3(%arg0: i32, %arg1: i32) -> (i32, i32) {
    %c0_i32 = arith.constant 0 : i32
    %c0_i32_0 = arith.constant 0 : i32
    %c0_i32_1 = arith.constant 0 : i32
    return %c0_i32, %c0_i32_0 : i32, i32
  }
  func.func @transform_4(%arg0: i32, %arg1: i32) -> (i32, i32) {
    %c0_i32 = arith.constant 0 : i32
    %c0_i32_0 = arith.constant 0 : i32
    %c0_i32_1 = arith.constant 0 : i32
    return %c0_i32, %c0_i32_0 : i32, i32
  }
  func.func @transform_5(%arg0: i32, %arg1: i32) -> (i32, i32) {
    %c0_i32 = arith.constant 0 : i32
    %c0_i32_0 = arith.constant 0 : i32
    return %arg0, %c0_i32 : i32, i32
  }
  func.func @transform_6(%arg0: i32, %arg1: i32) -> (i32, i32) {
    %c0_i32 = arith.constant 0 : i32
    %c0_i32_0 = arith.constant 0 : i32
    return %c0_i32, %arg1 : i32, i32
  }
  func.func @transform_7(%arg0: i32, %arg1: i32) -> (i32, i32) {
    %c0_i32 = arith.constant 0 : i32
    %c0_i32_0 = arith.constant 0 : i32
    return %arg0, %c0_i32 : i32, i32
  }
  func.func @transform_8(%arg0: i32, %arg1: i32) -> (i32, i32) {
    %c0_i32 = arith.constant 0 : i32
    %c0_i32_0 = arith.constant 0 : i32
    return %c0_i32, %arg1 : i32, i32
  }
  func.func @transform_9(%arg0: i32, %arg1: i32) -> (i32, i32) {
    %c0_i32 = arith.constant 0 : i32
    %c0_i32_0 = arith.constant 0 : i32
    return %arg0, %c0_i32 : i32, i32
  }
}

</mosaic_0001>

<bundles_post_ra>
// kernel: tpu_custom_call.1
= control target key start
LH: loop header
LB: loop body
LE: loop exit
PB: predicated region body
PF: predicated region fallthrough
CT: control target
= control target key end

     0   :  { %14 = vsyncpa [#allocation4], 0  ;;  %s1660_s0 = inlined_call_operand.vmem [shape: f32[5], index: 0, kind: input, shape index: {}]   ;;  %s1661_s1 = inlined_call_operand.vmem [shape: bf16[128,32], index: 1, kind: input, shape index: {}]   ;;  %s1662_s2 = inlined_call_operand.vmem [shape: bf16[128,32], index: 2, kind: input, shape index: {}]   ;;  %s1663_s3 = inlined_call_operand.vmem [shape: bf16[128,32], index: 3, kind: input, shape index: {}]   ;;  %s1664_s4 = inlined_call_operand.vmem [shape: bf16[128,32], index: 4, kind: input, shape index: {}]   ;;  %s1665_s5 = inlined_call_operand.vmem [shape: f32[128,1], index: 5, kind: input, shape index: {}]   ;;  %s1666_s6 = inlined_call_operand.vmem [shape: f32[1,128], index: 6, kind: input, shape index: {}]   ;;  %s1667_s7 = inlined_call_operand.vmem [shape: f32[128,1], index: 7, kind: input, shape index: {}]   ;;  %s1668_s8 = inlined_call_operand.vmem [shape: f32[1,128], index: 8, kind: input, shape index: {}]   ;;  %s1669_s9 = inlined_call_operand.hbm [shape: f32[8,128], index: 9, kind: output, shape index: {}]  }
   0x1   :  { %15 = vsyncpa [#allocation3], 0  ;;  %s21_s11 = sshll.u32 %s1660_s0, 4  ;;  %s1282_s12 = smov [#allocation2]   ;;  %s22_s11 = int_to_ptr.vmem [resolvable:$true] %s21_s11 }
   0x2   :  { %24 = dma.vmem_to_smem %s22_s11, 16, %s1282_s12, [#allocation4]  }
   0x3   :  { %1278 = dma.done.wait [#allocation4], 16  }
   0x4   :  { %1279 = vsyncadd [#allocation4], 4294967280 }
   0x5   :  { %45 = sfence }
   0x6   :  { %v1176_v0 = vld [vmem:[%s1663_s3 + $0x38] sm:$0xff]  ;;  %vm202_vm0 = vcmask 261120   ;;  %v1175_v4 = vld [vmem:[%s1663_s3 + $0x30] sm:$0xff]  ;;  %v1174_v8 = vld [vmem:[%s1663_s3 + $0x28] sm:$0xff]  ;;  %v1283_v31 = vmov 0   ;;  %vm934_vm1 = vcmask 7168  }
   0x7   :  { %v1184_v1 = vld [vmem:[%s1664_s4 + $0x38] sm:$0xff]  ;;  %v1345_v2 = vsel %vm202_vm0, %v1176_v0, 0  ;;  %v1183_v5 = vld [vmem:[%s1664_s4 + $0x30] sm:$0xff]  ;;  %v1357_v6 = vsel %vm202_vm0, %v1175_v4, 0  ;;  %v1182_v9 = vld [vmem:[%s1664_s4 + $0x28] sm:$0xff]  ;;  %v1369_v10 = vsel %vm202_vm0, %v1174_v8, 0  ;;  %1205 = vset.pattern.permute.xlu0 %v1283_v31  ;;  %1206 = vset.pattern.permute.xlu1 %v1283_v31 }
   0x8   :  { %v249_v3 = vsel %vm202_vm0, %v1184_v1, 0  ;;  %364 = vmatpush.bf16.xpose.msra.mxu1 %v1345_v2  ;;  %477 = vmatpush.bf16.xpose.msra.mxu2 %v1345_v2  ;;  %v246_v7 = vsel %vm202_vm0, %v1183_v5, 0  ;;  %v243_v11 = vsel %vm202_vm0, %v1182_v9, 0  ;;  %v1173_v12 = vld [vmem:[%s1663_s3 + $0x20] sm:$0xff]  ;;  %v1172_v16 = vld [vmem:[%s1663_s3 + $0x18] sm:$0xff]  ;;  %v1171_v20 = vld [vmem:[%s1663_s3 + $0x10] sm:$0xff] }
   0x9   :  { %251 = vmatpush.bf16.xpose.msra.mxu0 %v249_v3  ;;  %1185 = vmatpush.bf16.xpose.msra.mxu3 %v249_v3  ;;  %v1181_v13 = vld [vmem:[%s1664_s4 + $0x20] sm:$0xff]  ;;  %v1381_v14 = vsel %vm202_vm0, %v1173_v12, 0  ;;  %v1180_v17 = vld [vmem:[%s1664_s4 + $0x18] sm:$0xff]  ;;  %v350_v18 = vsel %vm202_vm0, %v1172_v16, 0  ;;  %v1179_v21 = vld [vmem:[%s1664_s4 + $0x10] sm:$0xff]  ;;  %v347_v22 = vsel %vm202_vm0, %v1171_v20, 0 }
   0xa   :  { %v240_v15 = vsel %vm202_vm0, %v1181_v13, 0  ;;  %v237_v19 = vsel %vm202_vm0, %v1180_v17, 0  ;;  %v234_v23 = vsel %vm202_vm0, %v1179_v21, 0  ;;  %v1170_v24 = vld [vmem:[%s1663_s3 + $0x8] sm:$0xff]  ;;  %v542_v28 = vld [vmem:[%s1665_s5] sm:$0xff]  ;;  %1207 = vset.pattern.permute.xlu2 %v1283_v31  ;;  %v544_v37 = vld [vmem:[%s1665_s5 + $0x10] sm:$0xff] }
   0xb   :  { %v1178_v25 = vld [vmem:[%s1664_s4 + $0x8] sm:$0xff]  ;;  %v344_v26 = vsel %vm202_vm0, %v1170_v24, 0  ;;  %v1169_v29 = vld [vmem:[%s1663_s3] sm:$0xff]  ;;  %560 = vperm.xlu0 %1205, %v542_v28   ;;  %570 = vperm.xlu1 %1206, %v544_v37   ;;  %v545_v38 = vld [vmem:[%s1665_s5 + $0x18] sm:$0xff]  ;;  %s1284_s0 = smov [#allocation5]   ;;  %s987_s19 = sshll.u32 %s1669_s9, 4  ;;  %s988_s19 = int_to_ptr.hbm [resolvable:$true] %s987_s19 }
   0xc   :  { %v231_v27 = vsel %vm202_vm0, %v1178_v25, 0  ;;  %v1177_v30 = vld [vmem:[%s1664_s4] sm:$0xff]  ;;  %v341_v32 = vsel %vm202_vm0, %v1169_v29, 0  ;;  %v543_v34 = vld [vmem:[%s1665_s5 + $0x8] sm:$0xff]  ;;  %v1159_v41 = vld [vmem:[%s1661_s1 + $0x30] sm:$0xff]  ;;  %s985_s17 = sshll.u32 %s1284_s0, 4  ;;  %s986_s17 = int_to_ptr.vmem [resolvable:$true] %s985_s17 }
   0xd   :  { %v228_v33 = vsel %vm202_vm0, %v1177_v30, 0  ;;  %v1153_v35 = vld [vmem:[%s1661_s1] sm:$0xff]  ;;  %v1154_v39 = vld [vmem:[%s1661_s1 + $0x8] sm:$0xff]  ;;  %v1155_v42 = vld [vmem:[%s1661_s1 + $0x10] sm:$0xff] }
   0xe   :  { %v1161_v36 = vld [vmem:[%s1662_s2] sm:$0xff]  ;;  %v1162_v40 = vld [vmem:[%s1662_s2 + $0x8] sm:$0xff]  ;;  %v1163_v43 = vld [vmem:[%s1662_s2 + $0x10] sm:$0xff] }
   0xf   :  { %v548_v44 = vld [vmem:[%s1665_s5 + $0x30] sm:$0xff]  ;;  %v1160_v45 = vld [vmem:[%s1661_s1 + $0x38] sm:$0xff]  ;;  %v546_v46 = vld [vmem:[%s1665_s5 + $0x20] sm:$0xff] }
  0x10   :  { %365 = vmatpush.bf16.xpose.msra.mxu1 %v1357_v6  ;;  %478 = vmatpush.bf16.xpose.msra.mxu2 %v1357_v6  ;;  %v549_v47 = vld [vmem:[%s1665_s5 + $0x38] sm:$0xff]  ;;  %v551_v48 = vld [vmem:[%s1665_s5 + $0x48] sm:$0xff]  ;;  %v554_v51 = vld [vmem:[%s1665_s5 + $0x60] sm:$0xff] }
  0x11   :  { %252 = vmatpush.bf16.xpose.msra.mxu0 %v246_v7  ;;  %1186 = vmatpush.bf16.xpose.msra.mxu3 %v246_v7  ;;  %v1156_v49 = vld [vmem:[%s1661_s1 + $0x18] sm:$0xff]  ;;  %v547_v52 = vld [vmem:[%s1665_s5 + $0x28] sm:$0xff]  ;;  %v552_v53 = vld [vmem:[%s1665_s5 + $0x50] sm:$0xff] }
  0x12   :  { %580 = vperm.xlu2 %1207, %v546_v46   ;;  %v1164_v50 = vld [vmem:[%s1662_s2 + $0x18] sm:$0xff]  ;;  %v1157_v55 = vld [vmem:[%s1661_s1 + $0x20] sm:$0xff]  ;;  %v555_v57 = vld [vmem:[%s1665_s5 + $0x68] sm:$0xff] }
  0x13   :  { %565 = vperm.xlu0 %1205, %v543_v34   ;;  %575 = vperm.xlu1 %1206, %v545_v38   ;;  %v557_v54 = vld [vmem:[%s1665_s5 + $0x78] sm:$0xff]  ;;  %v1165_v56 = vld [vmem:[%s1662_s2 + $0x20] sm:$0xff]  ;;  %v1158_v59 = vld [vmem:[%s1661_s1 + $0x28] sm:$0xff] }
  0x14   :  { %v550_v58 = vld [vmem:[%s1665_s5 + $0x40] sm:$0xff]  ;;  %v1166_v60 = vld [vmem:[%s1662_s2 + $0x28] sm:$0xff]  ;;  %v553_v61 = vld [vmem:[%s1665_s5 + $0x58] sm:$0xff] }
  0x15   :  { %v1167_v62 = vld [vmem:[%s1662_s2 + $0x30] sm:$0xff]  ;;  %v1168_v0 = vld [vmem:[%s1662_s2 + $0x38] sm:$0xff]  ;;  %v1545_v7 = vld [vmem:[%s1666_s6] ss:$0 sm:$0xff] }
  0x16   :  { %v556_v63 = vld [vmem:[%s1665_s5 + $0x70] sm:$0xff] }
  0x18   :  { %366 = vmatpush.bf16.xpose.msra.mxu1 %v1369_v10  ;;  %479 = vmatpush.bf16.xpose.msra.mxu2 %v1369_v10 }
  0x19   :  { %253 = vmatpush.bf16.xpose.msra.mxu0 %v243_v11  ;;  %1187 = vmatpush.bf16.xpose.msra.mxu3 %v243_v11 }
  0x1a   :  { %585 = vperm.xlu2 %1207, %v547_v52  }
  0x1b   :  { %590 = vperm.xlu0 %1205, %v548_v44   ;;  %595 = vperm.xlu1 %1206, %v549_v47   ;;  %v1553_v44 = vld [vmem:[%s1668_s8] ss:$0 sm:$0xff] }
  0x20   :  { %367 = vmatpush.bf16.xpose.msra.mxu1 %v1381_v14  ;;  %480 = vmatpush.bf16.xpose.msra.mxu2 %v1381_v14 }
  0x21   :  { %254 = vmatpush.bf16.xpose.msra.mxu0 %v240_v15  ;;  %1188 = vmatpush.bf16.xpose.msra.mxu3 %v240_v15 }
  0x22   :  { %600 = vperm.xlu2 %1207, %v550_v58  }
  0x23   :  { %605 = vperm.xlu0 %1205, %v551_v48   ;;  %610 = vperm.xlu1 %1206, %v552_v53  }
  0x28   :  { %368 = vmatpush.bf16.xpose.msra.mxu1 %v350_v18  ;;  %481 = vmatpush.bf16.xpose.msra.mxu2 %v350_v18 }
  0x29   :  { %255 = vmatpush.bf16.xpose.msra.mxu0 %v237_v19  ;;  %1189 = vmatpush.bf16.xpose.msra.mxu3 %v237_v19 }
  0x2a   :  { %615 = vperm.xlu2 %1207, %v553_v61  }
  0x2b   :  { %620 = vperm.xlu0 %1205, %v554_v51   ;;  %625 = vperm.xlu1 %1206, %v555_v57  }
  0x30   :  { %369 = vmatpush.bf16.xpose.msra.mxu1 %v347_v22  ;;  %482 = vmatpush.bf16.xpose.msra.mxu2 %v347_v22 }
  0x31   :  { %256 = vmatpush.bf16.xpose.msra.mxu0 %v234_v23  ;;  %1190 = vmatpush.bf16.xpose.msra.mxu3 %v234_v23 }
  0x32   :  { %630 = vperm.xlu2 %1207, %v556_v63  }
  0x33   :  { %635 = vperm.xlu0 %1205, %v557_v54  }
  0x38   :  { %370 = vmatpush.bf16.xpose.msra.mxu1 %v344_v26  ;;  %483 = vmatpush.bf16.xpose.msra.mxu2 %v344_v26 }
  0x39   :  { %257 = vmatpush.bf16.xpose.msra.mxu0 %v231_v27  ;;  %1191 = vmatpush.bf16.xpose.msra.mxu3 %v231_v27 }
  0x40   :  { %371 = vmatpush.bf16.xpose.msra.mxu1 %v341_v32  ;;  %484 = vmatpush.bf16.xpose.msra.mxu2 %v341_v32 }
  0x41   :  { %258 = vmatpush.bf16.xpose.msra.mxu0 %v228_v33  ;;  %1192 = vmatpush.bf16.xpose.msra.mxu3 %v228_v33 }
  0x47   :  { %1105 = vmatmul.msk.bf16.vlgmr.msra.gmra.mxu1 %vm202_vm0, %v1153_v35  ;;  %1145 = vmatmul.msk.bf16.vlgmr.msra.gmra.mxu2 %vm202_vm0, %v1161_v36 }
  0x48   :  { %1065 = vmatmul.msk.bf16.vlgmr.msra.gmra.mxu0 %vm202_vm0, %v1153_v35  ;;  %1071 = vmatmul.msk.bf16.vlgmr.msra.gmra.mxu3 %vm202_vm0, %v1159_v41 }
  0x49   :  { %1193 = vmatpush.bf16.xpose.msrb.mxu3 %v1345_v2 }
  0x51   :  { %1194 = vmatpush.bf16.xpose.msrb.mxu3 %v1357_v6 }
  0x57   :  { %1106 = vmatmul.msk.bf16.gmra.mxu1 %vm202_vm0, %v1154_v39  ;;  %1146 = vmatmul.msk.bf16.gmra.mxu2 %vm202_vm0, %v1162_v40 }
  0x58   :  { %1066 = vmatmul.msk.bf16.gmra.mxu0 %vm202_vm0, %v1154_v39  ;;  %1072 = vmatmul.msk.bf16.gmra.mxu3 %vm202_vm0, %v1160_v45 }
  0x59   :  { %1195 = vmatpush.bf16.xpose.msrb.mxu3 %v1369_v10 }
  0x61   :  { %1196 = vmatpush.bf16.xpose.msrb.mxu3 %v1381_v14 }
  0x67   :  { %1107 = vmatmul.msk.bf16.gmra.mxu1 %vm202_vm0, %v1155_v42  ;;  %1147 = vmatmul.msk.bf16.gmra.mxu2 %vm202_vm0, %v1163_v43 }
  0x68   :  { %1067 = vmatmul.msk.bf16.gmra.mxu0 %vm202_vm0, %v1155_v42 }
  0x69   :  { %1197 = vmatpush.bf16.xpose.msrb.mxu3 %v350_v18 }
  0x6c   :  { %v581_v58 = vpop.permute.xlu2 %580 }
  0x71   :  { %1198 = vmatpush.bf16.xpose.msrb.mxu3 %v347_v22 }
  0x77   :  { %1108 = vmatmul.msk.bf16.gmra.mxu1 %vm202_vm0, %v1156_v49  ;;  %1148 = vmatmul.msk.bf16.gmra.mxu2 %vm202_vm0, %v1164_v50 }
  0x78   :  { %1068 = vmatmul.msk.bf16.gmra.mxu0 %vm202_vm0, %v1156_v49 }
  0x79   :  { %1199 = vmatpush.bf16.xpose.msrb.mxu3 %v344_v26 }
  0x7d   :  { %v561_v4 = vpop.permute.xlu0 %560  ;;  %v571_v23 = vpop.permute.xlu1 %570 }
  0x81   :  { %1200 = vmatpush.bf16.xpose.msrb.mxu3 %v341_v32 }
  0x85   :  { %v566_v15 = vpop.permute.xlu0 %565 }
  0x87   :  { %1109 = vmatmul.msk.bf16.gmra.mxu1 %vm202_vm0, %v1157_v55  ;;  %1149 = vmatmul.msk.bf16.gmra.mxu2 %vm202_vm0, %v1165_v56 }
  0x88   :  { %1112 = vmatmul.msk.bf16.vlgmr.msrb.gmra.mxu3 %vm202_vm0, %v1160_v45  ;;  %1069 = vmatmul.msk.bf16.gmra.mxu0 %vm202_vm0, %v1157_v55 }
  0x97   :  { %1110 = vmatmul.msk.bf16.gmra.mxu1 %vm202_vm0, %v1158_v59  ;;  %1150 = vmatmul.msk.bf16.gmra.mxu2 %vm202_vm0, %v1166_v60 }
  0x98   :  { %1070 = vmatmul.msk.bf16.gmra.mxu0 %vm202_vm0, %v1158_v59 }
  0xa7   :  { %1111 = vmatmul.msk.bf16.gmra.mxu1 %vm202_vm0, %v1159_v41  ;;  %1151 = vmatmul.msk.bf16.gmra.mxu2 %vm202_vm0, %v1167_v62  ;;  %v576_v41 = vpop.permute.xlu1 %575 }
  0xb7   :  { %1152 = vmatmul.msk.bf16.gmra.mxu2 %vm202_vm0, %v1168_v0 }
  0xc4   :  { %v373_v1 = vpop.f32.mrf.mxu1 }
  0xc5   :  { %v260_v2 = vpop.f32.mrf.mxu0 }
  0xc6   :  { %v374_v3 = vadd.f32 %v373_v1, %v260_v2 }
  0xca   :  { %v486_v5 = vpop.f32.mrf.mxu2 }
  0xcb   :  { %v526_v6 = vadd.f32 %v486_v5, %v374_v3 }
  0xcc   :  { %v375_v8 = vpop.f32.mrf.mxu1 }
  0xcd   :  { %v638_v9 = vadd.f32 %v561_v4, %v526_v6  ;;  %v262_v10 = vpop.f32.mrf.mxu0 }
  0xce   :  { %v376_v12 = vadd.f32 %v375_v8, %v262_v10 }
  0xcf   :  { %v658_v11 = vadd.f32 %v1545_v7, %v638_v9 }
  0xd1   :  { %v674_v13 = vmin.f32 %v658_v11, 0.0 }
  0xd2   :  { %v488_v14 = vpop.f32.mrf.mxu2 }
  0xd3   :  { %v690_v16 = vmul.f32 1.442695, %v674_v13  ;;  %v527_v17 = vadd.f32 %v488_v14, %v376_v12 }
  0xd4   :  { %v378_v18 = vpop.f32.mrf.mxu1 }
  0xd5   :  { %1210 = vpow2.f32 %v690_v16  ;;  %v639_v19 = vadd.f32 %v566_v15, %v527_v17  ;;  %v265_v20 = vpop.f32.mrf.mxu0 }
  0xd6   :  { %v379_v22 = vadd.f32 %v378_v18, %v265_v20 }
  0xd7   :  { %v659_v21 = vadd.f32 %v1545_v7, %v639_v19  ;;  %v586_v19 = vpop.permute.xlu2 %585 }
  0xd9   :  { %v675_v24 = vmin.f32 %v659_v21, 0.0 }
  0xda   :  { %v491_v25 = vpop.f32.mrf.mxu2 }
  0xdb   :  { %v1211_v26 = vpop.eup %1210  ;;  %v692_v27 = vmul.f32 1.442695, %v675_v24  ;;  %v528_v28 = vadd.f32 %v491_v25, %v379_v22 }
  0xdc   :  { %v722_v29 = vmul.f32 %v1211_v26, %v1211_v26  ;;  %v380_v30 = vpop.f32.mrf.mxu1 }
  0xdd   :  { %1212 = vpow2.f32 %v692_v27  ;;  %v640_v31 = vadd.f32 %v571_v23, %v528_v28  ;;  %v267_v32 = vpop.f32.mrf.mxu0 }
  0xde   :  { %v738_v33 = vadd.f32 %v1211_v26, %v722_v29  ;;  %v754_v34 = vmul.f32 %v722_v29, %v722_v29  ;;  %v381_v36 = vadd.f32 %v380_v30, %v267_v32 }
  0xdf   :  { %v660_v35 = vadd.f32 %v1545_v7, %v640_v31 }
  0xe0   :  { %v770_v37 = vadd.f32 %v754_v34, %v738_v33  ;;  %v786_v38 = vmul.f32 %v754_v34, %v754_v34 }
  0xe1   :  { %v676_v39 = vmin.f32 %v660_v35, 0.0 }
  0xe2   :  { %v493_v40 = vpop.f32.mrf.mxu2  ;;  %v802_v42 = vadd.f32 %v786_v38, %v770_v37  ;;  %v818_v43 = vmul.f32 %v786_v38, %v786_v38 }
  0xe3   :  { %v1213_v45 = vpop.eup %1212  ;;  %v694_v46 = vmul.f32 1.442695, %v676_v39  ;;  %v529_v47 = vadd.f32 %v493_v40, %v381_v36 }
  0xe4   :  { %v723_v48 = vmul.f32 %v1213_v45, %v1213_v45  ;;  %v383_v49 = vpop.f32.mrf.mxu1  ;;  %v834_v50 = vadd.f32 %v818_v43, %v802_v42 }
  0xe5   :  { %1214 = vpow2.f32 %v694_v46  ;;  %v641_v51 = vadd.f32 %v576_v41, %v529_v47  ;;  %v270_v52 = vpop.f32.mrf.mxu0  ;;  %v591_v46 = vpop.permute.xlu0 %590 }
  0xe6   :  { %v854_v53 = vmul.f32 %v1553_v44, %v834_v50  ;;  %v739_v54 = vadd.f32 %v1213_v45, %v723_v48  ;;  %v755_v55 = vmul.f32 %v723_v48, %v723_v48  ;;  %v384_v57 = vadd.f32 %v383_v49, %v270_v52 }
  0xe7   :  { %v661_v56 = vadd.f32 %v1545_v7, %v641_v51 }
  0xe8   :  { %870 = vadd.xlane.f32.xlu1 %v854_v53  ;;  %v771_v59 = vadd.f32 %v755_v55, %v739_v54  ;;  %v787_v60 = vmul.f32 %v755_v55, %v755_v55 }
  0xe9   :  { %v677_v61 = vmin.f32 %v661_v56, 0.0 }
  0xea   :  { %v496_v62 = vpop.f32.mrf.mxu2  ;;  %v803_v63 = vadd.f32 %v787_v60, %v771_v59  ;;  %v819_v0 = vmul.f32 %v787_v60, %v787_v60  ;;  %v596_v60 = vpop.permute.xlu1 %595 }
  0xeb   :  { %v1215_v1 = vpop.eup %1214  ;;  %v696_v2 = vmul.f32 1.442695, %v677_v61  ;;  %v530_v3 = vadd.f32 %v496_v62, %v384_v57 }
  0xec   :  { %v724_v4 = vmul.f32 %v1215_v1, %v1215_v1  ;;  %v385_v5 = vpop.f32.mrf.mxu1  ;;  %v835_v6 = vadd.f32 %v819_v0, %v803_v63 }
  0xed   :  { %1216 = vpow2.f32 %v696_v2  ;;  %v642_v8 = vadd.f32 %v581_v58, %v530_v3  ;;  %v272_v9 = vpop.f32.mrf.mxu0 }
  0xee   :  { %v855_v10 = vmul.f32 %v1553_v44, %v835_v6  ;;  %v740_v11 = vadd.f32 %v1215_v1, %v724_v4  ;;  %v756_v12 = vmul.f32 %v724_v4, %v724_v4  ;;  %v386_v14 = vadd.f32 %v385_v5, %v272_v9 }
  0xef   :  { %v662_v13 = vadd.f32 %v1545_v7, %v642_v8 }
  0xf0   :  { %872 = vadd.xlane.f32.xlu2 %v855_v10  ;;  %v772_v15 = vadd.f32 %v756_v12, %v740_v11  ;;  %v788_v16 = vmul.f32 %v756_v12, %v756_v12 }
  0xf1   :  { %v678_v17 = vmin.f32 %v662_v13, 0.0 }
  0xf2   :  { %v498_v18 = vpop.f32.mrf.mxu2  ;;  %v804_v20 = vadd.f32 %v788_v16, %v772_v15  ;;  %v820_v21 = vmul.f32 %v788_v16, %v788_v16 }
  0xf3   :  { %v1217_v22 = vpop.eup %1216  ;;  %v698_v23 = vmul.f32 1.442695, %v678_v17  ;;  %v531_v24 = vadd.f32 %v498_v18, %v386_v14  ;;  %v601_v17 = vpop.permute.xlu2 %600 }
  0xf4   :  { %v725_v25 = vmul.f32 %v1217_v22, %v1217_v22  ;;  %v388_v26 = vpop.f32.mrf.mxu1  ;;  %v836_v27 = vadd.f32 %v820_v21, %v804_v20 }
  0xf5   :  { %1218 = vpow2.f32 %v698_v23  ;;  %v643_v28 = vadd.f32 %v586_v19, %v531_v24  ;;  %v275_v29 = vpop.f32.mrf.mxu0  ;;  %v1565_v23 = vpop.f32.mrf.mxu3 }
  0xf6   :  { %v856_v30 = vmul.f32 %v1553_v44, %v836_v27  ;;  %v741_v31 = vadd.f32 %v1217_v22, %v725_v25  ;;  %v757_v32 = vmul.f32 %v725_v25, %v725_v25  ;;  %v389_v34 = vadd.f32 %v388_v26, %v275_v29 }
  0xf7   :  { %v663_v33 = vadd.f32 %v1545_v7, %v643_v28 }
  0xf8   :  { %874 = vadd.xlane.f32.xlu0 %v856_v30  ;;  %v773_v35 = vadd.f32 %v757_v32, %v741_v31  ;;  %v789_v36 = vmul.f32 %v757_v32, %v757_v32 }
  0xf9   :  { %v679_v37 = vmin.f32 %v663_v33, 0.0 }
  0xfa   :  { %v501_v38 = vpop.f32.mrf.mxu2  ;;  %v805_v39 = vadd.f32 %v789_v36, %v773_v35  ;;  %v821_v40 = vmul.f32 %v789_v36, %v789_v36 }
  0xfb   :  { %v1219_v41 = vpop.eup %1218  ;;  %v700_v42 = vmul.f32 1.442695, %v679_v37  ;;  %v532_v43 = vadd.f32 %v501_v38, %v389_v34 }
  0xfc   :  { %v726_v45 = vmul.f32 %v1219_v41, %v1219_v41  ;;  %v390_v47 = vpop.f32.mrf.mxu1  ;;  %v837_v48 = vadd.f32 %v821_v40, %v805_v39 }
  0xfd   :  { %1220 = vpow2.f32 %v700_v42  ;;  %v644_v49 = vadd.f32 %v591_v46, %v532_v43  ;;  %v277_v50 = vpop.f32.mrf.mxu0  ;;  %v606_v43 = vpop.permute.xlu0 %605 }
  0xfe   :  { %v857_v51 = vmul.f32 %v1553_v44, %v837_v48  ;;  %v742_v52 = vadd.f32 %v1219_v41, %v726_v45  ;;  %v758_v53 = vmul.f32 %v726_v45, %v726_v45  ;;  %v391_v55 = vadd.f32 %v390_v47, %v277_v50  ;;  %v1569_v50 = vpop.f32.mrf.mxu3 }
  0xff   :  { %v664_v54 = vadd.f32 %v1545_v7, %v644_v49 }
 0x100   :  { %876 = vadd.xlane.f32.xlu2 %v857_v51  ;;  %v774_v56 = vadd.f32 %v758_v53, %v742_v52  ;;  %v790_v57 = vmul.f32 %v758_v53, %v758_v53 }
 0x101   :  { %v680_v58 = vmin.f32 %v664_v54, 0.0 }
 0x102   :  { %v503_v59 = vpop.f32.mrf.mxu2  ;;  %v806_v61 = vadd.f32 %v790_v57, %v774_v56  ;;  %v822_v62 = vmul.f32 %v790_v57, %v790_v57 }
 0x103   :  { %v1221_v63 = vpop.eup %1220  ;;  %v702_v0 = vmul.f32 1.442695, %v680_v58  ;;  %v533_v1 = vadd.f32 %v503_v59, %v391_v55 }
 0x104   :  { %v727_v2 = vmul.f32 %v1221_v63, %v1221_v63  ;;  %v393_v3 = vpop.f32.mrf.mxu1  ;;  %v838_v4 = vadd.f32 %v822_v62, %v806_v61 }
 0x105   :  { %1222 = vpow2.f32 %v702_v0  ;;  %v645_v5 = vadd.f32 %v596_v60, %v533_v1  ;;  %v280_v6 = vpop.f32.mrf.mxu0 }
 0x106   :  { %v858_v8 = vmul.f32 %v1553_v44, %v838_v4  ;;  %v743_v9 = vadd.f32 %v1221_v63, %v727_v2  ;;  %v759_v10 = vmul.f32 %v727_v2, %v727_v2  ;;  %v394_v12 = vadd.f32 %v393_v3, %v280_v6  ;;  %v611_v2 = vpop.permute.xlu1 %610 }
 0x107   :  { %v665_v11 = vadd.f32 %v1545_v7, %v645_v5 }
 0x108   :  { %878 = vadd.xlane.f32.xlu1 %v858_v8  ;;  %v775_v13 = vadd.f32 %v759_v10, %v743_v9  ;;  %v791_v14 = vmul.f32 %v759_v10, %v759_v10 }
 0x109   :  { %v681_v15 = vmin.f32 %v665_v11, 0.0 }
 0x10a   :  { %v506_v16 = vpop.f32.mrf.mxu2  ;;  %v807_v18 = vadd.f32 %v791_v14, %v775_v13  ;;  %v823_v19 = vmul.f32 %v791_v14, %v791_v14  ;;  %v1575_v13 = vpop.f32.mrf.mxu3 }
 0x10b   :  { %v1223_v20 = vpop.eup %1222  ;;  %v704_v21 = vmul.f32 1.442695, %v681_v15  ;;  %v534_v22 = vadd.f32 %v506_v16, %v394_v12 }
 0x10c   :  { %v395_v24 = vpop.f32.mrf.mxu1  ;;  %v839_v25 = vadd.f32 %v823_v19, %v807_v18  ;;  %v728_v26 = vmul.f32 %v1223_v20, %v1223_v20 }
 0x10d   :  { %1224 = vpow2.f32 %v704_v21  ;;  %v646_v27 = vadd.f32 %v601_v17, %v534_v22  ;;  %v282_v28 = vpop.f32.mrf.mxu0 }
 0x10e   :  { %v859_v29 = vmul.f32 %v1553_v44, %v839_v25  ;;  %v744_v30 = vadd.f32 %v1223_v20, %v728_v26  ;;  %v760_v31 = vmul.f32 %v728_v26, %v728_v26  ;;  %v396_v33 = vadd.f32 %v395_v24, %v282_v28  ;;  %v616_v24 = vpop.permute.xlu2 %615 }
 0x10f   :  { %v666_v32 = vadd.f32 %v1545_v7, %v646_v27 }
 0x110   :  { %880 = vadd.xlane.f32.xlu2 %v859_v29  ;;  %v776_v34 = vadd.f32 %v760_v31, %v744_v30  ;;  %v792_v35 = vmul.f32 %v760_v31, %v760_v31 }
 0x111   :  { %v682_v36 = vmin.f32 %v666_v32, 0.0 }
 0x112   :  { %v508_v37 = vpop.f32.mrf.mxu2  ;;  %v808_v38 = vadd.f32 %v792_v35, %v776_v34  ;;  %v824_v39 = vmul.f32 %v792_v35, %v792_v35 }
 0x113   :  { %v1225_v40 = vpop.eup %1224  ;;  %v706_v41 = vmul.f32 1.442695, %v682_v36  ;;  %v535_v42 = vadd.f32 %v508_v37, %v396_v33  ;;  %v297_v37 = vpop.f32.mrf.mxu3 }
 0x114   :  { %v729_v45 = vmul.f32 %v1225_v40, %v1225_v40  ;;  %v398_v46 = vpop.f32.mrf.mxu1  ;;  %v840_v47 = vadd.f32 %v824_v39, %v808_v38 }
 0x115   :  { %1226 = vpow2.f32 %v706_v41  ;;  %v647_v48 = vadd.f32 %v606_v43, %v535_v42  ;;  %v285_v49 = vpop.f32.mrf.mxu0 }
 0x116   :  { %v860_v51 = vmul.f32 %v1553_v44, %v840_v47  ;;  %v745_v52 = vadd.f32 %v1225_v40, %v729_v45  ;;  %v761_v53 = vmul.f32 %v729_v45, %v729_v45  ;;  %v399_v55 = vadd.f32 %v398_v46, %v285_v49  ;;  %v621_v45 = vpop.permute.xlu0 %620 }
 0x117   :  { %v667_v54 = vadd.f32 %v1545_v7, %v647_v48 }
 0x118   :  { %882 = vadd.xlane.f32.xlu0 %v860_v51  ;;  %v777_v56 = vadd.f32 %v761_v53, %v745_v52  ;;  %v793_v57 = vmul.f32 %v761_v53, %v761_v53 }
 0x119   :  { %v683_v58 = vmin.f32 %v667_v54, 0.0 }
 0x11a   :  { %v511_v59 = vpop.f32.mrf.mxu2  ;;  %v809_v60 = vadd.f32 %v793_v57, %v777_v56  ;;  %v825_v61 = vmul.f32 %v793_v57, %v793_v57 }
 0x11b   :  { %v1227_v62 = vpop.eup %1226  ;;  %v708_v63 = vmul.f32 1.442695, %v683_v58  ;;  %v536_v0 = vadd.f32 %v511_v59, %v399_v55 }
 0x11c   :  { %v730_v1 = vmul.f32 %v1227_v62, %v1227_v62  ;;  %v400_v3 = vpop.f32.mrf.mxu1  ;;  %v841_v4 = vadd.f32 %v825_v61, %v809_v60 }
 0x11d   :  { %1228 = vpow2.f32 %v708_v63  ;;  %v648_v5 = vadd.f32 %v611_v2, %v536_v0  ;;  %v287_v6 = vpop.f32.mrf.mxu0  ;;  %v626_v0 = vpop.permute.xlu1 %625 }
 0x11e   :  { %v861_v8 = vmul.f32 %v1553_v44, %v841_v4  ;;  %v746_v9 = vadd.f32 %v1227_v62, %v730_v1  ;;  %v762_v10 = vmul.f32 %v730_v1, %v730_v1  ;;  %v401_v12 = vadd.f32 %v400_v3, %v287_v6  ;;  %v408_v1 = vpop.f32.mrf.mxu3 }
 0x11f   :  { %v668_v11 = vadd.f32 %v1545_v7, %v648_v5 }
 0x120   :  { %884 = vadd.xlane.f32.xlu1 %v861_v8  ;;  %v778_v14 = vadd.f32 %v762_v10, %v746_v9  ;;  %v794_v15 = vmul.f32 %v762_v10, %v762_v10 }
 0x121   :  { %v684_v16 = vmin.f32 %v668_v11, 0.0  ;;  %v409_v11 = vadd.f32 %v408_v1, %v1575_v13 }
 0x122   :  { %v513_v17 = vpop.f32.mrf.mxu2  ;;  %v810_v18 = vadd.f32 %v794_v15, %v778_v14  ;;  %v826_v19 = vmul.f32 %v794_v15, %v794_v15 }
 0x123   :  { %v1229_v20 = vpop.eup %1228  ;;  %v710_v21 = vmul.f32 1.442695, %v684_v16  ;;  %v537_v22 = vadd.f32 %v513_v17, %v401_v12 }
 0x124   :  { %v403_v25 = vpop.f32.mrf.mxu1  ;;  %v842_v26 = vadd.f32 %v826_v19, %v810_v18  ;;  %v731_v27 = vmul.f32 %v1229_v20, %v1229_v20 }
 0x125   :  { %1230 = vpow2.f32 %v710_v21  ;;  %v649_v28 = vadd.f32 %v616_v24, %v537_v22  ;;  %v404_v36 = vadd.f32 %v403_v25, %v1565_v23 }
 0x126   :  { %v862_v29 = vmul.f32 %v1553_v44, %v842_v26  ;;  %v747_v30 = vadd.f32 %v1229_v20, %v731_v27  ;;  %v763_v31 = vmul.f32 %v731_v27, %v731_v27  ;;  %v631_v20 = vpop.permute.xlu2 %630  ;;  %v410_v25 = vpop.f32.mrf.mxu3 }
 0x127   :  { %v669_v32 = vadd.f32 %v1545_v7, %v649_v28 }
 0x128   :  { %886 = vadd.xlane.f32.xlu2 %v862_v29  ;;  %v779_v33 = vadd.f32 %v763_v31, %v747_v30  ;;  %v795_v34 = vmul.f32 %v763_v31, %v763_v31  ;;  %v411_v31 = vadd.f32 %v410_v25, %v297_v37  ;;  %v906_v25 = vld [vmem:[%s1667_s7 + $0x20] sm:$0xff] }
 0x129   :  { %v685_v35 = vmin.f32 %v669_v32, 0.0 }
 0x12a   :  { %v516_v38 = vpop.f32.mrf.mxu2  ;;  %v811_v39 = vadd.f32 %v795_v34, %v779_v33  ;;  %v827_v40 = vmul.f32 %v795_v34, %v795_v34 }
 0x12b   :  { %v1231_v41 = vpop.eup %1230  ;;  %v712_v42 = vmul.f32 1.442695, %v685_v35  ;;  %v538_v43 = vadd.f32 %v516_v38, %v404_v36 }
 0x12c   :  { %v843_v46 = vadd.f32 %v827_v40, %v811_v39  ;;  %v732_v47 = vmul.f32 %v1231_v41, %v1231_v41  ;;  %v405_v49 = vpop.f32.mrf.mxu1  ;;  %v636_v40 = vpop.permute.xlu0 %635 }
 0x12d   :  { %1232 = vpow2.f32 %v712_v42  ;;  %v650_v48 = vadd.f32 %v621_v45, %v538_v43  ;;  %v406_v57 = vadd.f32 %v405_v49, %v1569_v50 }
 0x12e   :  { %v863_v51 = vmul.f32 %v1553_v44, %v843_v46  ;;  %v748_v52 = vadd.f32 %v1231_v41, %v732_v47  ;;  %v764_v53 = vmul.f32 %v732_v47, %v732_v47 }
 0x12f   :  { %v670_v54 = vadd.f32 %v1545_v7, %v650_v48 }
 0x130   :  { %888 = vadd.xlane.f32.xlu0 %v863_v51  ;;  %v780_v23 = vadd.f32 %v764_v53, %v748_v52  ;;  %v796_v55 = vmul.f32 %v764_v53, %v764_v53 }
 0x131   :  { %v686_v56 = vmin.f32 %v670_v54, 0.0 }
 0x132   :  { %v518_v58 = vpop.f32.mrf.mxu2  ;;  %v812_v59 = vadd.f32 %v796_v55, %v780_v23  ;;  %v828_v60 = vmul.f32 %v796_v55, %v796_v55 }
 0x133   :  { %v1233_v61 = vpop.eup %1232  ;;  %v714_v62 = vmul.f32 1.442695, %v686_v56  ;;  %v539_v63 = vadd.f32 %v518_v58, %v406_v57 }
 0x134   :  { %v844_v2 = vadd.f32 %v828_v60, %v812_v59  ;;  %v733_v3 = vmul.f32 %v1233_v61, %v1233_v61 }
 0x135   :  { %1234 = vpow2.f32 %v714_v62  ;;  %v651_v4 = vadd.f32 %v626_v0, %v539_v63 }
 0x136   :  { %v864_v5 = vmul.f32 %v1553_v44, %v844_v2  ;;  %v749_v6 = vadd.f32 %v1233_v61, %v733_v3  ;;  %v765_v8 = vmul.f32 %v733_v3, %v733_v3 }
 0x137   :  { %v671_v9 = vadd.f32 %v1545_v7, %v651_v4 }
 0x138   :  { %890 = vadd.xlane.f32.xlu1 %v864_v5  ;;  %v781_v50 = vadd.f32 %v765_v8, %v749_v6  ;;  %v797_v10 = vmul.f32 %v765_v8, %v765_v8 }
 0x139   :  { %v687_v12 = vmin.f32 %v671_v9, 0.0 }
 0x13a   :  { %v521_v14 = vpop.f32.mrf.mxu2  ;;  %v813_v15 = vadd.f32 %v797_v10, %v781_v50  ;;  %v829_v16 = vmul.f32 %v797_v10, %v797_v10 }
 0x13b   :  { %v1235_v17 = vpop.eup %1234  ;;  %v716_v18 = vmul.f32 1.442695, %v687_v12  ;;  %v540_v19 = vadd.f32 %v521_v14, %v409_v11 }
 0x13c   :  { %v845_v21 = vadd.f32 %v829_v16, %v813_v15  ;;  %v734_v22 = vmul.f32 %v1235_v17, %v1235_v17  ;;  %v903_v16 = vld [vmem:[%s1667_s7 + $0x8] sm:$0xff] }
 0x13d   :  { %1236 = vpow2.f32 %v716_v18  ;;  %v652_v24 = vadd.f32 %v631_v20, %v540_v19  ;;  %v902_v18 = vld [vmem:[%s1667_s7] sm:$0xff]  ;;  %v904_v19 = vld [vmem:[%s1667_s7 + $0x10] sm:$0xff] }
 0x13e   :  { %v865_v26 = vmul.f32 %v1553_v44, %v845_v21  ;;  %v750_v27 = vadd.f32 %v1235_v17, %v734_v22  ;;  %v766_v28 = vmul.f32 %v734_v22, %v734_v22  ;;  %v905_v21 = vld [vmem:[%s1667_s7 + $0x18] sm:$0xff] }
 0x13f   :  { %v672_v29 = vadd.f32 %v1545_v7, %v652_v24 }
 0x140   :  { %892 = vadd.xlane.f32.xlu2 %v865_v26  ;;  %v782_v13 = vadd.f32 %v766_v28, %v750_v27  ;;  %v798_v30 = vmul.f32 %v766_v28, %v766_v28 }
 0x141   :  { %v688_v32 = vmin.f32 %v672_v29, 0.0  ;;  %v907_v29 = vld [vmem:[%s1667_s7 + $0x28] sm:$0xff] }
 0x142   :  { %v523_v33 = vpop.f32.mrf.mxu2  ;;  %v814_v34 = vadd.f32 %v798_v30, %v782_v13  ;;  %v830_v35 = vmul.f32 %v798_v30, %v798_v30 }
 0x143   :  { %v1237_v36 = vpop.eup %1236  ;;  %v718_v38 = vmul.f32 1.442695, %v688_v32  ;;  %v541_v39 = vadd.f32 %v523_v33, %v411_v31 }
 0x144   :  { %v846_v41 = vadd.f32 %v830_v35, %v814_v34  ;;  %v735_v42 = vmul.f32 %v1237_v36, %v1237_v36  ;;  %v908_v34 = vld [vmem:[%s1667_s7 + $0x30] sm:$0xff] }
 0x145   :  { %1238 = vpow2.f32 %v718_v38  ;;  %v653_v43 = vadd.f32 %v636_v40, %v541_v39  ;;  %v909_v40 = vld [vmem:[%s1667_s7 + $0x38] sm:$0xff] }
 0x146   :  { %v866_v45 = vmul.f32 %v1553_v44, %v846_v41  ;;  %v751_v46 = vadd.f32 %v1237_v36, %v735_v42  ;;  %v767_v47 = vmul.f32 %v735_v42, %v735_v42 }
 0x147   :  { %v673_v48 = vadd.f32 %v1545_v7, %v653_v43 }
 0x148   :  { %894 = vadd.xlane.f32.xlu0 %v866_v45  ;;  %v783_v37 = vadd.f32 %v767_v47, %v751_v46  ;;  %v799_v49 = vmul.f32 %v767_v47, %v767_v47  ;;  %v910_v45 = vld [vmem:[%s1667_s7 + $0x40] sm:$0xff] }
 0x149   :  { %v689_v51 = vmin.f32 %v673_v48, 0.0 }
 0x14a   :  { %v815_v52 = vadd.f32 %v799_v49, %v783_v37  ;;  %v831_v53 = vmul.f32 %v799_v49, %v799_v49  ;;  %v911_v49 = vld [vmem:[%s1667_s7 + $0x48] sm:$0xff] }
 0x14b   :  { %v1239_v54 = vpop.eup %1238  ;;  %v720_v23 = vmul.f32 1.442695, %v689_v51 }
 0x14c   :  { %v847_v55 = vadd.f32 %v831_v53, %v815_v52  ;;  %v736_v56 = vmul.f32 %v1239_v54, %v1239_v54 }
 0x14d   :  { %1240 = vpow2.f32 %v720_v23  ;;  %v912_v23 = vld [vmem:[%s1667_s7 + $0x50] sm:$0xff] }
 0x14e   :  { %v867_v57 = vmul.f32 %v1553_v44, %v847_v55  ;;  %v752_v58 = vadd.f32 %v1239_v54, %v736_v56  ;;  %v768_v59 = vmul.f32 %v736_v56, %v736_v56 }
 0x150   :  { %896 = vadd.xlane.f32.xlu1 %v867_v57  ;;  %v784_v60 = vadd.f32 %v768_v59, %v752_v58  ;;  %v800_v61 = vmul.f32 %v768_v59, %v768_v59  ;;  %v913_v59 = vld [vmem:[%s1667_s7 + $0x58] sm:$0xff] }
 0x152   :  { %v816_v62 = vadd.f32 %v800_v61, %v784_v60  ;;  %v832_v7 = vmul.f32 %v800_v61, %v800_v61 }
 0x153   :  { %v1241_v63 = vpop.eup %1240 }
 0x154   :  { %v848_v0 = vadd.f32 %v832_v7, %v816_v62  ;;  %v737_v1 = vmul.f32 %v1241_v63, %v1241_v63  ;;  %v914_v7 = vld [vmem:[%s1667_s7 + $0x60] sm:$0xff] }
 0x156   :  { %v868_v2 = vmul.f32 %v1553_v44, %v848_v0  ;;  %v753_v3 = vadd.f32 %v1241_v63, %v737_v1  ;;  %v769_v4 = vmul.f32 %v737_v1, %v737_v1 }
 0x158   :  { %898 = vadd.xlane.f32.xlu2 %v868_v2  ;;  %v785_v5 = vadd.f32 %v769_v4, %v753_v3  ;;  %v801_v6 = vmul.f32 %v769_v4, %v769_v4  ;;  %v915_v3 = vld [vmem:[%s1667_s7 + $0x68] sm:$0xff] }
 0x15a   :  { %v817_v8 = vadd.f32 %v801_v6, %v785_v5  ;;  %v833_v9 = vmul.f32 %v801_v6, %v801_v6 }
 0x15b   :  { %v871_v12 = vpop.xlane.xlu1 %870 }
 0x15c   :  { %v849_v50 = vadd.f32 %v833_v9, %v817_v8  ;;  %v918_v22 = vmul.f32 %v902_v18, %v871_v12  ;;  %v916_v9 = vld [vmem:[%s1667_s7 + $0x70] sm:$0xff] }
 0x15e   :  { %v869_v10 = vmul.f32 %v1553_v44, %v849_v50  ;;  %v935_v30 = vsel %vm934_vm1, %v918_v22, 0.0 }
 0x160   :  { %900 = vadd.xlane.f32.xlu0 %v869_v10 }
 0x163   :  { %v873_v11 = vpop.xlane.xlu2 %872 }
 0x164   :  { %v919_v44 = vmul.f32 %v903_v16, %v873_v11 }
 0x166   :  { %v936_v27 = vsel %vm934_vm1, %v919_v44, 0.0 }
 0x167   :  { %v937_v33 = vadd.f32 %v936_v27, %v935_v30 }
 0x16b   :  { %v875_v15 = vpop.xlane.xlu0 %874 }
 0x16c   :  { %v920_v24 = vmul.f32 %v904_v19, %v875_v15  ;;  %v917_v19 = vld [vmem:[%s1667_s7 + $0x78] sm:$0xff] }
 0x16e   :  { %v938_v31 = vsel %vm934_vm1, %v920_v24, 0.0 }
 0x16f   :  { %v939_v39 = vadd.f32 %v938_v31, %v937_v33 }
 0x173   :  { %v877_v14 = vpop.xlane.xlu2 %876 }
 0x174   :  { %v921_v28 = vmul.f32 %v905_v21, %v877_v14 }
 0x176   :  { %v940_v36 = vsel %vm934_vm1, %v921_v28, 0.0 }
 0x177   :  { %v941_v43 = vadd.f32 %v940_v36, %v939_v39 }
 0x17b   :  { %v879_v17 = vpop.xlane.xlu1 %878 }
 0x17c   :  { %v922_v32 = vmul.f32 %v906_v25, %v879_v17 }
 0x17e   :  { %v942_v41 = vsel %vm934_vm1, %v922_v32, 0.0 }
 0x17f   :  { %v943_v37 = vadd.f32 %v942_v41, %v941_v43 }
 0x183   :  { %v881_v20 = vpop.xlane.xlu2 %880 }
 0x184   :  { %v923_v38 = vmul.f32 %v907_v29, %v881_v20 }
 0x186   :  { %v944_v47 = vsel %vm934_vm1, %v923_v38, 0.0 }
 0x187   :  { %v945_v54 = vadd.f32 %v944_v47, %v943_v37 }
 0x18b   :  { %v883_v26 = vpop.xlane.xlu0 %882 }
 0x18c   :  { %v924_v42 = vmul.f32 %v908_v34, %v883_v26 }
 0x18e   :  { %v946_v52 = vsel %vm934_vm1, %v924_v42, 0.0 }
 0x18f   :  { %v947_v58 = vadd.f32 %v946_v52, %v945_v54 }
 0x193   :  { %v885_v13 = vpop.xlane.xlu1 %884 }
 0x194   :  { %v925_v48 = vmul.f32 %v909_v40, %v885_v13 }
 0x196   :  { %v948_v56 = vsel %vm934_vm1, %v925_v48, 0.0 }
 0x197   :  { %v949_v62 = vadd.f32 %v948_v56, %v947_v58 }
 0x19b   :  { %v887_v35 = vpop.xlane.xlu2 %886 }
 0x19c   :  { %v926_v53 = vmul.f32 %v910_v45, %v887_v35 }
 0x19e   :  { %v950_v60 = vsel %vm934_vm1, %v926_v53, 0.0 }
 0x19f   :  { %v951_v2 = vadd.f32 %v950_v60, %v949_v62 }
 0x1a3   :  { %v889_v46 = vpop.xlane.xlu0 %888 }
 0x1a4   :  { %v927_v57 = vmul.f32 %v911_v49, %v889_v46 }
 0x1a6   :  { %v952_v0 = vsel %vm934_vm1, %v927_v57, 0.0 }
 0x1a7   :  { %v953_v8 = vadd.f32 %v952_v0, %v951_v2 }
 0x1ab   :  { %v891_v51 = vpop.xlane.xlu1 %890 }
 0x1ac   :  { %v928_v61 = vmul.f32 %v912_v23, %v891_v51 }
 0x1ae   :  { %v954_v5 = vsel %vm934_vm1, %v928_v61, 0.0 }
 0x1af   :  { %v955_v12 = vadd.f32 %v954_v5, %v953_v8 }
 0x1b3   :  { %v893_v55 = vpop.xlane.xlu2 %892 }
 0x1b4   :  { %v929_v1 = vmul.f32 %v913_v59, %v893_v55 }
 0x1b6   :  { %v956_v10 = vsel %vm934_vm1, %v929_v1, 0.0 }
 0x1b7   :  { %v957_v16 = vadd.f32 %v956_v10, %v955_v12 }
 0x1bb   :  { %v895_v63 = vpop.xlane.xlu0 %894 }
 0x1bc   :  { %v930_v6 = vmul.f32 %v914_v7, %v895_v63 }
 0x1be   :  { %v958_v14 = vsel %vm934_vm1, %v930_v6, 0.0 }
 0x1bf   :  { %v959_v18 = vadd.f32 %v958_v14, %v957_v16 }
 0x1c3   :  { %v897_v4 = vpop.xlane.xlu1 %896 }
 0x1c4   :  { %v931_v11 = vmul.f32 %v915_v3, %v897_v4 }
 0x1c6   :  { %v960_v17 = vsel %vm934_vm1, %v931_v11, 0.0 }
 0x1c7   :  { %v961_v44 = vadd.f32 %v960_v17, %v959_v18 }
 0x1cb   :  { %v899_v50 = vpop.xlane.xlu2 %898 }
 0x1cc   :  { %v932_v15 = vmul.f32 %v916_v9, %v899_v50 }
 0x1ce   :  { %v962_v20 = vsel %vm934_vm1, %v932_v15, 0.0 }
 0x1cf   :  { %v963_v24 = vadd.f32 %v962_v20, %v961_v44 }
 0x1d3   :  { %v901_v21 = vpop.xlane.xlu0 %900 }
 0x1d4   :  { %v933_v22 = vmul.f32 %v917_v19, %v901_v21 }
 0x1d6   :  { %v964_v25 = vsel %vm934_vm1, %v933_v22, 0.0 }
 0x1d7   :  { %v965_v26 = vadd.f32 %v964_v25, %v963_v24 }
 0x1d9   :  { %v966_v27 = vrot.slane %v965_v26, 4 }
 0x1db   :  { %v967_v28 = vadd.f32 %v966_v27, %v965_v26 }
 0x1dd   :  { %v968_v29 = vrot.slane %v967_v28, 2 }
 0x1df   :  { %v969_v13 = vadd.f32 %v968_v29, %v967_v28 }
 0x1e1   :  { %v970_v30 = vrot.slane %v969_v13, 1 }
 0x1e3   :  { %v971_v31 = vadd.f32 %v970_v30, %v969_v13 }
 0x1e5   :  { %975 = vperm.xlu1 %1206, %v971_v31  }
 0x257   :  { %v976_v32 = vpop.permute.xlu1 %975 }
 0x258   :  { %979 = vst [vmem:[#allocation5] sm:$0xff] %v976_v32 }
 0x259   :  { %990 = dma.vmem_to_hbm [thread:$0]  %s986_s17, 128, %s988_s19, [#allocation3]  }
 0x25a   :  { %1280 = dma.done.wait [#allocation3], 128  }
 0x25b   :  { %1281 = vsyncadd [#allocation3], 4294967168 }
 0x25c   :  { %995 = vsyncpa [#allocation3], 1 }
 0x25d   :  { %996 = vsyncpa [#allocation4], 1 }

</bundles_post_ra>
